<compile_context>
chip_gen: v5e
topology: v5e:2x2
jax: 0.10.0
libtpu: 0.0.40
codegen_flags: <defaults>
</compile_context>

<pallas_src>
import functools

import jax
import jax.numpy as jnp
from jax import lax
from jax.experimental import pallas as pl
from jax.experimental.pallas import tpu as pltpu


def _sentence_attention_kernel(x_ref, w_ref, o_ref, m_sc, l_sc, acc_sc,
                               *, seq_len, tile_s):
    """One streaming-softmax step over a (tile_s, Dp) slab of sequence rows."""
    pid = pl.program_id(0)

    @pl.when(pid == 0)
    def _init():
        m_sc[...] = jnp.full_like(m_sc, -jnp.inf)
        l_sc[...] = jnp.zeros_like(l_sc)
        acc_sc[...] = jnp.zeros_like(acc_sc)

    x = x_ref[...].astype(jnp.float32)          # (TS, Dp)
    w = w_ref[...].astype(jnp.float32)          # (1, Dp)

    # attn row = w @ x.T  -> (1, TS): contraction over the hidden (lane) axis
    # on the MXU; the sequence lives on the lane axis of the logits.
    attn = lax.dot_general(w, x, (((1,), (1,)), ((), ())),
                           preferred_element_type=jnp.float32)   # (1, TS)

    # Mask sequence-padding positions so they get exactly zero softmax weight.
    lane = lax.broadcasted_iota(jnp.int32, attn.shape, 1) + pid * tile_s
    attn = jnp.where(lane < seq_len, attn, -jnp.inf)

    m_old = m_sc[...]                                            # (1, 1)
    m_new = jnp.maximum(m_old, jnp.max(attn, axis=1, keepdims=True))
    alpha = jnp.exp(m_old - m_new)                               # (1, 1)
    p = jnp.exp(attn - m_new)                                    # (1, TS), 0 on pads

    l_sc[...] = alpha * l_sc[...] + jnp.sum(p, axis=1, keepdims=True)

    # Weighted contribution: p @ x -> (1, Dp), contraction over the sequence
    # axis on the MXU (M=1, K=TS, N=Dp).
    contrib = lax.dot_general(p, x, (((1,), (0,)), ((), ())),
                              preferred_element_type=jnp.float32)  # (1, Dp)
    acc_sc[...] = alpha * acc_sc[...] + contrib
    m_sc[...] = m_new

    @pl.when(pid == pl.num_programs(0) - 1)
    def _finalize():
        # Exact divide: runs once per call; the approx EUP reciprocal's
        # ~1.5e-3 relative error was the source of the correctness failure.
        o_ref[...] = (acc_sc[...] / l_sc[...]).astype(o_ref.dtype)


def sentence_attention(x, w1, *, tile_s=None):
    """x: (S, D), w1: (D,)  ->  (D,)   (== SentenceAttention.forward)."""
    S, D = x.shape
    assert w1.shape == (D,)

    # Lane-dense layout: pad hidden dim to a multiple of 128.
    Dp = ((D + 127) // 128) * 128

    # Sequence tile: multiple of 8 sublanes; keep the double-buffered x slab
    # well within scoped VMEM (also safe on v7x's 64 MiB physical VMEM).
    def _round8(n):
        return ((n + 7) // 8) * 8

    budget_bytes = 24 << 20                       # for 2 x (TS, Dp) f32 buffers
    ts_cap = max(8, (budget_bytes // (2 * Dp * 4)) // 8 * 8)
    if tile_s is None:
        tile_s = min(1024, ts_cap, _round8(S))
    else:
        tile_s = min(_round8(tile_s), ts_cap)
    tile_s = max(8, tile_s)

    n_tiles = pl.cdiv(S, tile_s)
    s_pad = n_tiles * tile_s

    x_p = jnp.pad(x, ((0, s_pad - S), (0, Dp - D)))
    w_p = jnp.pad(w1, (0, Dp - D)).reshape(1, Dp)

    kernel = functools.partial(_sentence_attention_kernel,
                               seq_len=S, tile_s=tile_s)

    out = pl.pallas_call(
        kernel,
        out_shape=jax.ShapeDtypeStruct((1, Dp), x.dtype),
        grid_spec=pltpu.PrefetchScalarGridSpec(
            num_scalar_prefetch=0,
            grid=(n_tiles,),
            in_specs=[
                pl.BlockSpec((tile_s, Dp), lambda i: (i, 0)),   # streamed x
                pl.BlockSpec((1, Dp), lambda i: (0, 0)),        # w1 resident
            ],
            out_specs=pl.BlockSpec((1, Dp), lambda i: (0, 0)),  # resident acc out
            scratch_shapes=[
                pltpu.VMEM((1, 1), jnp.float32),    # running max m
                pltpu.VMEM((1, 1), jnp.float32),    # running denom l
                pltpu.VMEM((1, Dp), jnp.float32),   # running weighted sum
            ],
        ),
        compiler_params=pltpu.CompilerParams(
            dimension_semantics=("arbitrary",),     # reduction over S
            vmem_limit_bytes=32 << 20,
        ),
    )(x_p, w_p)
    return out[0, :D]


def _reference(x, w1):
    attn = x @ w1                                  # (S,)
    attn = attn - jnp.max(attn)
    p = jnp.exp(attn) / jnp.sum(jnp.exp(attn))     # softmax over dim 0
    return jnp.sum(x * p[:, None], axis=0)         # (D,)


if __name__ == "__main__":
    key = jax.random.PRNGKey(0)
    k_x, k_w, k_x2 = jax.random.split(key, 3)

    # Shapes implied by the module: seq=8, hidden=32 (single sentence).
    S, D = 8, 32
    x = jax.random.normal(k_x, (S, D), dtype=jnp.float32)
    w1 = jax.random.normal(k_w, (D,), dtype=jnp.float32)  # nn.Parameter(randn(input_dim))

    out = sentence_attention(x, w1)
    jax.block_until_ready(out)
    ref = _reference(x, w1)
    assert out.shape == (D,)
    assert jnp.allclose(out, ref, atol=1e-3, rtol=1e-3), (out, ref)

    # Exercise the multi-tile streaming-softmax path (init / rescale / mask /
    # finalize) with a small forced tile.
    S2 = 40
    x2 = jax.random.normal(k_x2, (S2, D), dtype=jnp.float32)
    out2 = sentence_attention(x2, w1, tile_s=16)
    jax.block_until_ready(out2)
    ref2 = _reference(x2, w1)
    assert jnp.allclose(out2, ref2, atol=1e-3, rtol=1e-3), (out2, ref2)

    # TODO(synk): megacore batching (a parallel B axis over many sentences) is a
    # wrapper-level extension; the PyTorch module forward takes a single (S, D).
    print("KERNEL_OK")
</pallas_src>

<mosaic_0001>
module attributes {stable_mosaic.version = 11 : i64} {
  func.func @_sentence_attention_kernel(%arg0: i32, %arg1: memref<8x128xf32, #tpu.memory_space<vmem>>, %arg2: memref<1x128xf32, #tpu.memory_space<vmem>>, %arg3: memref<1x128xf32, #tpu.memory_space<vmem>>, %arg4: memref<1x1xf32, #tpu.memory_space<vmem>>, %arg5: memref<1x1xf32, #tpu.memory_space<vmem>>, %arg6: memref<1x128xf32, #tpu.memory_space<vmem>>) attributes {dimension_semantics = [#tpu.dimension_semantics<arbitrary>], iteration_bounds = array<i64: 1>, scalar_prefetch = 0 : i64, scratch_operands = 3 : i64, tpu.core_type = #tpu.core_type<tc>, window_params = [{transform_indices = @transform_0, window_bounds = array<i64: 8, 128>}, {pipeline_mode = #tpu.pipeline_mode<synchronous>, transform_indices = @transform_1, window_bounds = array<i64: 1, 128>}, {pipeline_mode = #tpu.pipeline_mode<synchronous>, transform_indices = @transform_2, window_bounds = array<i64: 1, 128>}]} {
    %c0_i32 = arith.constant 0 : i32
    %0 = arith.cmpi eq, %arg0, %c0_i32 : i32
    %1 = arith.extui %0 : i1 to i32
    %c0_i32_0 = arith.constant 0 : i32
    %2 = arith.cmpi ne, %1, %c0_i32_0 : i32
    scf.if %2 {
      %cst_23 = arith.constant 0xFF800000 : f32
      %39 = vector.broadcast %cst_23 : f32 to vector<1x1xf32>
      %c0_24 = arith.constant 0 : index
      %c0_25 = arith.constant 0 : index
      %40 = vector.load %arg4[%c0_24, %c0_25] : memref<1x1xf32, #tpu.memory_space<vmem>>, vector<1x1xf32>
      tpu.vector_store %arg4[%c0_24, %c0_25], %39 {strides = array<i32>} : memref<1x1xf32, #tpu.memory_space<vmem>>, vector<1x1xf32>,
      %cst_26 = arith.constant 0.000000e+00 : f32
      %41 = vector.broadcast %cst_26 : f32 to vector<1x1xf32>
      %c0_27 = arith.constant 0 : index
      %c0_28 = arith.constant 0 : index
      %42 = vector.load %arg5[%c0_27, %c0_28] : memref<1x1xf32, #tpu.memory_space<vmem>>, vector<1x1xf32>
      tpu.vector_store %arg5[%c0_27, %c0_28], %41 {strides = array<i32>} : memref<1x1xf32, #tpu.memory_space<vmem>>, vector<1x1xf32>,
      %cst_29 = arith.constant 0.000000e+00 : f32
      %43 = vector.broadcast %cst_29 : f32 to vector<1x128xf32>
      %c0_30 = arith.constant 0 : index
      %c0_31 = arith.constant 0 : index
      %44 = vector.load %arg6[%c0_30, %c0_31] : memref<1x128xf32, #tpu.memory_space<vmem>>, vector<1x128xf32>
      tpu.vector_store %arg6[%c0_30, %c0_31], %43 {strides = array<i32>} : memref<1x128xf32, #tpu.memory_space<vmem>>, vector<1x128xf32>,
    } else {
    }
    %c0 = arith.constant 0 : index
    %c0_1 = arith.constant 0 : index
    %3 = vector.load %arg1[%c0, %c0_1] : memref<8x128xf32, #tpu.memory_space<vmem>>, vector<8x128xf32>
    %c0_2 = arith.constant 0 : index
    %c0_3 = arith.constant 0 : index
    %4 = vector.load %arg2[%c0_2, %c0_3] : memref<1x128xf32, #tpu.memory_space<vmem>>, vector<1x128xf32>
    %cst = arith.constant dense<0.000000e+00> : vector<1x8xf32>
    %5 = tpu.matmul %4, %3, %cst {dimension_numbers = #tpu.dot_dimension_numbers<[1], [1], [0], [0], [0, 0, 1, 0], [], []>} : vector<1x128xf32>, vector<8x128xf32>, vector<1x8xf32> -> vector<1x8xf32>
    %6 = tpu.iota {dimensions = array<i32: 1>} : vector<1x8xi32>
    %c8_i32 = arith.constant 8 : i32
    %7 = arith.muli %arg0, %c8_i32 : i32
    %8 = vector.broadcast %7 : i32 to vector<1x8xi32>
    %9 = arith.addi %6, %8 : vector<1x8xi32>
    %c8_i32_4 = arith.constant 8 : i32
    %10 = vector.broadcast %c8_i32_4 : i32 to vector<1x8xi32>
    %11 = arith.cmpi slt, %9, %10 : vector<1x8xi32>
    %cst_5 = arith.constant 0xFF800000 : f32
    %12 = vector.broadcast %cst_5 : f32 to vector<1x8xf32>
    %13 = arith.select %11, %5, %12 : vector<1x8xi1>, vector<1x8xf32>
    %c0_6 = arith.constant 0 : index
    %c0_7 = arith.constant 0 : index
    %14 = vector.load %arg4[%c0_6, %c0_7] : memref<1x1xf32, #tpu.memory_space<vmem>>, vector<1x1xf32>
    %cst_8 = arith.constant dense<0xFF800000> : vector<1xf32>
    %15 = vector.multi_reduction <maximumf>, %13, %cst_8 [1] : vector<1x8xf32> to vector<1xf32>
    %16 = vector.shape_cast %15 : vector<1xf32> to vector<1x1xf32>
    %17 = arith.maximumf %14, %16 : vector<1x1xf32>
    %18 = arith.subf %14, %17 : vector<1x1xf32>
    %19 = math.exp %18 : vector<1x1xf32>
    %20 = vector.broadcast %17 : vector<1x1xf32> to vector<1x8xf32>
    %21 = arith.subf %13, %20 : vector<1x8xf32>
    %22 = math.exp %21 : vector<1x8xf32>
    %c0_9 = arith.constant 0 : index
    %c0_10 = arith.constant 0 : index
    %23 = vector.load %arg5[%c0_9, %c0_10] : memref<1x1xf32, #tpu.memory_space<vmem>>, vector<1x1xf32>
    %24 = arith.mulf %19, %23 : vector<1x1xf32>
    %cst_11 = arith.constant dense<0.000000e+00> : vector<1xf32>
    %25 = vector.multi_reduction <add>, %22, %cst_11 [1] : vector<1x8xf32> to vector<1xf32>
    %26 = vector.shape_cast %25 : vector<1xf32> to vector<1x1xf32>
    %27 = arith.addf %24, %26 : vector<1x1xf32>
    %c0_12 = arith.constant 0 : index
    %c0_13 = arith.constant 0 : index
    %28 = vector.load %arg5[%c0_12, %c0_13] : memref<1x1xf32, #tpu.memory_space<vmem>>, vector<1x1xf32>
    tpu.vector_store %arg5[%c0_12, %c0_13], %27 {strides = array<i32>} : memref<1x1xf32, #tpu.memory_space<vmem>>, vector<1x1xf32>,
    %cst_14 = arith.constant dense<0.000000e+00> : vector<1x128xf32>
    %29 = tpu.matmul %22, %3, %cst_14 {dimension_numbers = #tpu.dot_dimension_numbers<[1], [0], [0], [1], [0, 0, 1, 1], [], []>} : vector<1x8xf32>, vector<8x128xf32>, vector<1x128xf32> -> vector<1x128xf32>
    %c0_15 = arith.constant 0 : index
    %c0_16 = arith.constant 0 : index
    %30 = vector.load %arg6[%c0_15, %c0_16] : memref<1x128xf32, #tpu.memory_space<vmem>>, vector<1x128xf32>
    %31 = vector.broadcast %19 : vector<1x1xf32> to vector<1x128xf32>
    %32 = arith.mulf %31, %30 : vector<1x128xf32>
    %33 = arith.addf %32, %29 : vector<1x128xf32>
    %c0_17 = arith.constant 0 : index
    %c0_18 = arith.constant 0 : index
    %34 = vector.load %arg6[%c0_17, %c0_18] : memref<1x128xf32, #tpu.memory_space<vmem>>, vector<1x128xf32>
    tpu.vector_store %arg6[%c0_17, %c0_18], %33 {strides = array<i32>} : memref<1x128xf32, #tpu.memory_space<vmem>>, vector<1x128xf32>,
    %c0_19 = arith.constant 0 : index
    %c0_20 = arith.constant 0 : index
    %35 = vector.load %arg4[%c0_19, %c0_20] : memref<1x1xf32, #tpu.memory_space<vmem>>, vector<1x1xf32>
    tpu.vector_store %arg4[%c0_19, %c0_20], %17 {strides = array<i32>} : memref<1x1xf32, #tpu.memory_space<vmem>>, vector<1x1xf32>,
    %c0_i32_21 = arith.constant 0 : i32
    %36 = arith.cmpi eq, %arg0, %c0_i32_21 : i32
    %37 = arith.extui %36 : i1 to i32
    %c0_i32_22 = arith.constant 0 : i32
    %38 = arith.cmpi ne, %37, %c0_i32_22 : i32
    scf.if %38 {
      %c0_23 = arith.constant 0 : index
      %c0_24 = arith.constant 0 : index
      %39 = vector.load %arg6[%c0_23, %c0_24] : memref<1x128xf32, #tpu.memory_space<vmem>>, vector<1x128xf32>
      %c0_25 = arith.constant 0 : index
      %c0_26 = arith.constant 0 : index
      %40 = vector.load %arg5[%c0_25, %c0_26] : memref<1x1xf32, #tpu.memory_space<vmem>>, vector<1x1xf32>
      %41 = vector.broadcast %40 : vector<1x1xf32> to vector<1x128xf32>
      %42 = arith.divf %39, %41 : vector<1x128xf32>
      %c0_27 = arith.constant 0 : index
      %c0_28 = arith.constant 0 : index
      %43 = vector.load %arg3[%c0_27, %c0_28] : memref<1x128xf32, #tpu.memory_space<vmem>>, vector<1x128xf32>
      tpu.vector_store %arg3[%c0_27, %c0_28], %42 {strides = array<i32>} : memref<1x128xf32, #tpu.memory_space<vmem>>, vector<1x128xf32>,
    } else {
    }
    return
  }
  func.func @transform_0(%arg0: i32) -> (i32, i32) {
    %c0_i32 = arith.constant 0 : i32
    %c0_i32_0 = arith.constant 0 : i32
    return %arg0, %c0_i32 : i32, i32
  }
  func.func @transform_1(%arg0: i32) -> (i32, i32) {
    %c0_i32 = arith.constant 0 : i32
    %c0_i32_0 = arith.constant 0 : i32
    %c0_i32_1 = arith.constant 0 : i32
    return %c0_i32, %c0_i32_0 : i32, i32
  }
  func.func @transform_2(%arg0: i32) -> (i32, i32) {
    %c0_i32 = arith.constant 0 : i32
    %c0_i32_0 = arith.constant 0 : i32
    %c0_i32_1 = arith.constant 0 : i32
    return %c0_i32, %c0_i32_0 : i32, i32
  }
}

</mosaic_0001>

<bundles_post_ra>
// kernel: tpu_custom_call.1
= control target key start
LH: loop header
LB: loop body
LE: loop exit
PB: predicated region body
PF: predicated region fallthrough
CT: control target
= control target key end

     0   :  { %7 = vsyncpa [#allocation6], 0  ;;  %s313_s0 = inlined_call_operand.hbm [shape: f32[8,128], index: 0, kind: input, shape index: {}]   ;;  %s314_s1 = inlined_call_operand.hbm [shape: f32[1,128], index: 1, kind: input, shape index: {}]   ;;  %s315_s2 = inlined_call_operand.hbm [shape: f32[1,128], index: 2, kind: output, shape index: {}]  }
   0x1   :  { %8 = vsyncpa [#allocation9], 0 }
   0x2   :  { %9 = vsyncpa [#allocation7], 0  ;;  %s15_s11 = sshll.u32 %s313_s0, 4  ;;  %s277_s12 = smov [#allocation5]   ;;  %s16_s11 = int_to_ptr.hbm [resolvable:$true] %s15_s11 }
   0x3   :  { %s17_s13 = sshll.u32 %s277_s12, 4  ;;  %s26_s16 = sshll.u32 %s314_s1, 4  ;;  %s18_s13 = int_to_ptr.vmem [resolvable:$true] %s17_s13  ;;  %s27_s16 = int_to_ptr.hbm [resolvable:$true] %s26_s16 }
   0x4   :  { %20 = dma.hbm_to_vmem [thread:$0]  %s16_s11, 128, %s18_s13, [#allocation6]  }
   0x5   :  { %s278_s17 = smov [#allocation8]  }
   0x6   :  { %s28_s18 = sshll.u32 %s278_s17, 4  ;;  %s29_s18 = int_to_ptr.vmem [resolvable:$true] %s28_s18 }
   0x7   :  { %31 = dma.hbm_to_vmem [thread:$0]  %s27_s16, 16, %s29_s18, [#allocation9]  }
   0x8   :  { %271 = dma.done.wait [#allocation6], 128  }
   0x9   :  { %272 = vsyncadd [#allocation6], 4294967168 }
   0xa   :  { %273 = dma.done.wait [#allocation9], 16  }
   0xb   :  { %274 = vsyncadd [#allocation9], 4294967280  ;;  %v48_v0 = vld [vmem:[#allocation5] sm:$0xff]  ;;  %v49_v1 = vld [vmem:[#allocation8] sm:$0x1]  ;;  %vm44_vm0 = vcmask 0   ;;  %v70_v3 = vlaneseq }
   0xc   :  { %65 = vmatpush.xpose.msra.mxu0 %v48_v0  ;;  %122 = vmatpush.msra.mxu1 %v48_v0  ;;  %v279_v2 = vmov -inf   ;;  %vm78_vm2 = vcmask 57344   ;;  %v280_v8 = vmov 0   ;;  %v281_v9 = vmov 0.0   ;;  %s282_s0 = smov [#allocation10]   ;;  %s172_s21 = sshll.u32 %s315_s2, 4  ;;  %s173_s21 = int_to_ptr.hbm [resolvable:$true] %s172_s21 }
   0xd   :  { %45 = vst.msk [vmem:[#allocation2] sm:$0x1] %vm44_vm0, %v279_v2  ;;  %v71_v4 = vand.u32 127, %v70_v3  ;;  %190 = vset.pattern.permute.xlu0 %v280_v8  ;;  %192 = vset.pattern.permute.xlu2 %v280_v8  ;;  %vm103_vm3 = vcmask 64512   ;;  %s170_s1 = sshll.u32 %s282_s0, 4  ;;  %s171_s1 = int_to_ptr.vmem [resolvable:$true] %s170_s1 }
   0xe   :  { %191 = vset.pattern.permute.xlu1 %v280_v8  ;;  %47 = vst [vmem:[#allocation4] sm:$0x1] %v281_v9 }
   0xf   :  { %66 = vmatmul.f32.vlgmr.msra.gmra.mxu0 %v49_v1  ;;  %vm75_vm1 = vcmp.lt.s32.totalorder %v71_v4, 8  ;;  %46 = vst.msk [vmem:[#allocation3] sm:$0x1] %vm44_vm0, %v281_v9 }
  0x14   :  { %v77_v10 = vld [vmem:[#allocation2] sm:$0x1] }
  0x15   :  { %v127_v28 = vld [vmem:[#allocation4] sm:$0x1] }
  0x16   :  { %v95_v22 = vld [vmem:[#allocation3] sm:$0x1] }
  0x8c   :  { %v67_v5 = vpop.f32.mrf.mxu0 }
  0x8d   :  { %v76_v6 = vsel %vm75_vm1, %v67_v5, -inf }
  0x8e   :  { %v79_v7 = vsel %vm78_vm2, %v76_v6, -inf }
  0x8f   :  { %80 = vmax.xlane.f32.xlu0 %v79_v7 }
 0x102   :  { %v81_v11 = vpop.xlane.xlu0 %80 }
 0x103   :  { %v82_v12 = vmax.f32 %v77_v10, %v81_v11 }
 0x105   :  { %v83_v13 = vsub.f32 %v77_v10, %v82_v12  ;;  %137 = vst.msk [vmem:[#allocation2] sm:$0x1] %vm44_vm0, %v82_v12  ;;  %88 = vperm.xlu0 %190, %v82_v12  }
 0x107   :  { %v84_v14 = vmul.f32 1.442695, %v83_v13 }
 0x109   :  { %193 = vpow2.f32 %v84_v14 }
 0x10f   :  { %v194_v15 = vpop.eup %193 }
 0x110   :  { %130 = vperm.xlu2 %192, %v194_v15   ;;  %v96_v23 = vmul.f32 %v194_v15, %v95_v22 }
 0x16a   :  { %v131_v25 = vpop.permute.xlu2 %130 }
 0x16b   :  { %v133_v27 = vperm.slane %v131_v25, 0 }
 0x16d   :  { %v134_v29 = vmul.f32 %v133_v27, %v127_v28 }
 0x177   :  { %v89_v16 = vpop.permute.xlu0 %88 }
 0x178   :  { %v91_v17 = vperm.slane %v89_v16, 0 }
 0x17a   :  { %v92_v18 = vsub.f32 %v76_v6, %v91_v17 }
 0x17c   :  { %v93_v19 = vmul.f32 1.442695, %v92_v18 }
 0x17e   :  { %195 = vpow2.f32 %v93_v19 }
 0x184   :  { %v196_v20 = vpop.eup %195 }
 0x185   :  { %183 = vmatmul.msk.f32.vlgmr.msra.gmra.mxu1 %vm103_vm3, %v196_v20  ;;  %v97_v21 = vsel %vm78_vm2, %v196_v20, 0.0 }
 0x186   :  { %98 = vadd.xlane.f32.xlu1 %v97_v21 }
 0x1f9   :  { %v99_v24 = vpop.xlane.xlu1 %98 }
 0x1fa   :  { %v100_v26 = vadd.f32 %v99_v24, %v96_v23 }
 0x1fc   :  { %102 = vst.msk [vmem:[#allocation3] sm:$0x1] %vm44_vm0, %v100_v26 }
 0x202   :  { %v124_v30 = vpop.f32.mrf.mxu1 }
 0x203   :  { %v135_v31 = vadd.f32 %v134_v29, %v124_v30  ;;  %v142_v32 = vld [vmem:[#allocation3] sm:$0x1] }
 0x204   :  { %145 = vperm.xlu1 %191, %v142_v32  }
 0x205   :  { %136 = vst [vmem:[#allocation4] sm:$0x1] %v135_v31 }
 0x20c   :  { %v141_v44 = vld [vmem:[#allocation4] sm:$0x1] }
 0x276   :  { %v146_v33 = vpop.permute.xlu1 %145 }
 0x277   :  { %v148_v34 = vperm.slane %v146_v33, 0 }
 0x279   :  { %197 = vrcp.f32 %v148_v34  ;;  %v160_v38 = vand.u32 2147483648, %v148_v34  ;;  %v158_v40 = vand.u32 2147483647, %v148_v34  ;;  %vm154_vm5 = vweird.f32 %v148_v34 }
 0x27b   :  { %v161_v42 = vor.u32 1.1754944e-38, %v160_v38  ;;  %vm159_vm7 = vcmp.eq.f32.partialorder %v158_v40, 8.507059e+37 }
 0x27f   :  { %v198_v35 = vpop.eup %197 }
 0x280   :  { %v150_v36 = vmul.f32 %v198_v35, %v148_v34  ;;  %vm155_vm4 = vweird.f32 %v198_v35 }
 0x281   :  { %vm156_vm6 = vmor %vm154_vm5, %vm155_vm4 }
 0x282   :  { %v151_v37 = vsub.f32 1.0, %v150_v36 }
 0x284   :  { %v152_v39 = vmul.f32 %v198_v35, %v151_v37 }
 0x286   :  { %v153_v41 = vadd.f32 %v198_v35, %v152_v39 }
 0x288   :  { %v157_v43 = vsel %vm156_vm6, %v198_v35, %v153_v41 }
 0x289   :  { %v162_v45 = vsel %vm159_vm7, %v161_v42, %v157_v43 }
 0x28a   :  { %v163_v46 = vmul.f32 %v162_v45, %v141_v44 }
 0x28c   :  { %164 = vst [vmem:[#allocation10] sm:$0x1] %v163_v46 }
 0x28d   :  { %175 = dma.vmem_to_hbm [thread:$0]  %s171_s1, 16, %s173_s21, [#allocation7]  }
 0x28e   :  { %275 = dma.done.wait [#allocation7], 16  }
 0x28f   :  { %276 = vsyncadd [#allocation7], 4294967280 }
 0x290   :  { %180 = vsyncpa [#allocation6], 1 }
 0x291   :  { %181 = vsyncpa [#allocation9], 1 }
 0x292   :  { %182 = vsyncpa [#allocation7], 1 }

</bundles_post_ra>
